<compile_context>
chip_gen: v6e
topology: v6e:2x2x1
jax: 0.10.0
libtpu: 0.0.40
codegen_flags: <defaults>
</compile_context>

<pallas_src>
import jax
import jax.numpy as jnp
from jax.experimental import pallas as pl
from jax.experimental.pallas import tpu as pltpu


# ----------------------------------------------------------------------------
# Phase 1: fused (im2col'd) conv matmul + BN sum / sumsq accumulation
# ----------------------------------------------------------------------------
def _conv_stats_kernel(x_ref, w_ref, y_ref, sum_ref, ssq_ref):
    """x_ref: (K*C_in, TL), w_ref: (C_out, K*C_in)
       y_ref: (C_out, TL) conv output tile (f32)
       sum_ref/ssq_ref: (C_out, 1) per-channel accumulators (resident across grid)."""
    @pl.when(pl.program_id(0) == 0)
    def _():
        sum_ref[...] = jnp.zeros_like(sum_ref)
        ssq_ref[...] = jnp.zeros_like(ssq_ref)

    # Single fat MXU matmul per lane tile (contraction depth K*C_in).
    y = jnp.dot(w_ref[...], x_ref[...], preferred_element_type=jnp.float32)
    y_ref[...] = y

    # BN statistics fused into the conv epilogue (y is still in vregs).
    sum_ref[...] += jnp.sum(y, axis=1, keepdims=True)
    ssq_ref[...] += jnp.sum(y * y, axis=1, keepdims=True)


# ----------------------------------------------------------------------------
# Phase 2: normalize (folded scale/shift) + ReLU, lane-dense
# ----------------------------------------------------------------------------
def _bn_relu_kernel(y_ref, scale_ref, shift_ref, o_ref):
    """y_ref: (C_out, TL) f32; scale/shift: (C_out, 1); o_ref: (C_out, TL)."""
    o_ref[...] = jnp.maximum(
        y_ref[...] * scale_ref[...] + shift_ref[...], 0.0
    ).astype(o_ref.dtype)


def block_forward(x, weight, bias, gamma, beta, *, dilation, padding,
                  eps=1e-5, lane_tile=512):
    """x: (N, C_in, L) f32; weight: (C_out, C_in, K); returns (N, C_out, L_out).

    `bias` is accepted for API parity with nn.Conv1d but is mathematically
    cancelled by the training-mode BatchNorm mean subtraction, so it is not used.
    """
    del bias  # exactly cancelled by BN (training-mode batch stats)

    N, C_in, L = x.shape
    C_out, _, K = weight.shape
    L_pad = L + 2 * padding
    L_out = L_pad - dilation * (K - 1)
    assert L_out > 0

    # ---- wrapper glue: pad, im2col (taps -> contraction dim), batch -> lanes ----
    x_pad = jnp.pad(x, ((0, 0), (0, 0), (padding, padding)))
    # (K, N, C_in, L_out): tap-k shifted windows of the padded signal
    taps = jnp.stack(
        [jax.lax.dynamic_slice_in_dim(x_pad, k * dilation, L_out, axis=2)
         for k in range(K)],
        axis=0)
    # -> (K, C_in, N, L_out) -> (K*C_in, N*L_out): lane-dense operand
    x_cols = jnp.transpose(taps, (0, 2, 1, 3)).reshape(K * C_in, N * L_out)
    x_cols = x_cols.astype(jnp.float32)
    # weight (C_out, C_in, K) -> (C_out, K, C_in) -> (C_out, K*C_in); row order
    # matches x_cols rows (k-major, then c_in).
    w_mat = jnp.transpose(weight, (0, 2, 1)).reshape(C_out, K * C_in)
    w_mat = w_mat.astype(jnp.float32)

    # ---- lane tiling (pad lanes to a tile multiple; zero cols are harmless:
    #      they contribute exactly 0 to sum/sumsq and are sliced off at the end) ----
    lanes = N * L_out
    if lanes <= lane_tile:
        tl = lanes                       # single full-width tile (small problems)
        lanes_pad = lanes
    else:
        tl = lane_tile                   # multiple of 128 -> lane-dense stores
        lanes_pad = pl.cdiv(lanes, tl) * tl
    if lanes_pad != lanes:
        x_cols = jnp.pad(x_cols, ((0, 0), (0, lanes_pad - lanes)))
    num_tiles = lanes_pad // tl

    # ---- phase 1: conv + stats ----
    y_flat, col_sum, col_ssq = pl.pallas_call(
        _conv_stats_kernel,
        out_shape=(
            jax.ShapeDtypeStruct((C_out, lanes_pad), jnp.float32),
            jax.ShapeDtypeStruct((C_out, 1), jnp.float32),
            jax.ShapeDtypeStruct((C_out, 1), jnp.float32),
        ),
        grid=(num_tiles,),
        in_specs=[
            pl.BlockSpec((K * C_in, tl), lambda i: (0, i)),
            pl.BlockSpec((C_out, K * C_in), lambda i: (0, 0)),
        ],
        out_specs=(
            pl.BlockSpec((C_out, tl), lambda i: (0, i)),
            pl.BlockSpec((C_out, 1), lambda i: (0, 0)),   # accumulator (resident)
            pl.BlockSpec((C_out, 1), lambda i: (0, 0)),   # accumulator (resident)
        ),
        compiler_params=pltpu.CompilerParams(
            dimension_semantics=("arbitrary",)),
    )(x_cols, w_mat)

    # ---- tiny per-channel BN math on (C_out,) vectors (glue) ----
    count = jnp.float32(N * L_out)                 # real (unpadded) columns only
    mean = col_sum[:, 0] / count
    var = col_ssq[:, 0] / count - mean * mean      # biased batch variance
    inv_std = jax.lax.rsqrt(var + eps)
    scale = (gamma.astype(jnp.float32) * inv_std).reshape(C_out, 1)
    shift = (beta.astype(jnp.float32) - gamma.astype(jnp.float32) * mean * inv_std
             ).reshape(C_out, 1)

    # ---- phase 2: normalize + ReLU (lane-dense FMA) ----
    out_flat = pl.pallas_call(
        _bn_relu_kernel,
        out_shape=jax.ShapeDtypeStruct((C_out, lanes_pad), x.dtype),
        grid=(num_tiles,),
        in_specs=[
            pl.BlockSpec((C_out, tl), lambda i: (0, i)),
            pl.BlockSpec((C_out, 1), lambda i: (0, 0)),
            pl.BlockSpec((C_out, 1), lambda i: (0, 0)),
        ],
        out_specs=pl.BlockSpec((C_out, tl), lambda i: (0, i)),
        compiler_params=pltpu.CompilerParams(
            dimension_semantics=("parallel",)),
    )(y_flat, scale, shift)

    # ---- back to PyTorch layout (N, C_out, L_out) ----
    out = out_flat[:, :lanes].reshape(C_out, N, L_out)
    return jnp.transpose(out, (1, 0, 2))


def block_reference(x, weight, bias, gamma, beta, *, dilation, padding, eps=1e-5):
    """Pure-JAX reference (Conv1d + training-mode BatchNorm1d + ReLU)."""
    y = jax.lax.conv_general_dilated(
        x, weight,
        window_strides=(1,),
        padding=[(padding, padding)],
        rhs_dilation=(dilation,),
        dimension_numbers=("NCH", "OIH", "NCH"),
    ) + bias.reshape(1, -1, 1)
    mean = jnp.mean(y, axis=(0, 2), keepdims=True)
    var = jnp.mean((y - mean) ** 2, axis=(0, 2), keepdims=True)
    y = (y - mean) / jnp.sqrt(var + eps) * gamma.reshape(1, -1, 1) + beta.reshape(1, -1, 1)
    return jnp.maximum(y, 0.0)


if __name__ == "__main__":
    # Block(filter_size, dilation, num_filters, input_filters, padding)
    filter_size = 3
    dilation = 2
    num_filters = 16      # C_out
    input_filters = 8     # C_in
    padding = 2           # keeps L_out == L for these settings

    # Small input consistent with Conv1d/BatchNorm1d: (batch, channels, length)
    N, L = 2, 32

    key = jax.random.PRNGKey(0)
    kx, kw, kb, kg, kbe = jax.random.split(key, 5)
    x = jax.random.normal(kx, (N, input_filters, L), dtype=jnp.float32)
    weight = jax.random.normal(kw, (num_filters, input_filters, filter_size),
                               dtype=jnp.float32) * 0.1
    bias = jax.random.normal(kb, (num_filters,), dtype=jnp.float32) * 0.1
    gamma = 1.0 + 0.1 * jax.random.normal(kg, (num_filters,), dtype=jnp.float32)
    beta = 0.1 * jax.random.normal(kbe, (num_filters,), dtype=jnp.float32)

    out = block_forward(x, weight, bias, gamma, beta,
                        dilation=dilation, padding=padding)
    out = jax.block_until_ready(out)

    ref = block_reference(x, weight, bias, gamma, beta,
                          dilation=dilation, padding=padding)
    assert out.shape == ref.shape, (out.shape, ref.shape)
    assert jnp.allclose(out, ref, rtol=1e-3, atol=1e-3), float(jnp.max(jnp.abs(out - ref)))

    print("KERNEL_OK")
</pallas_src>

<mosaic_0001>
module attributes {stable_mosaic.version = 11 : i64} {
  func.func @_conv_stats_kernel(%arg0: i32, %arg1: memref<24x64xf32, #tpu.memory_space<vmem>>, %arg2: memref<16x24xf32, #tpu.memory_space<vmem>>, %arg3: memref<16x64xf32, #tpu.memory_space<vmem>>, %arg4: memref<16x1xf32, #tpu.memory_space<vmem>>, %arg5: memref<16x1xf32, #tpu.memory_space<vmem>>) attributes {dimension_semantics = [#tpu.dimension_semantics<arbitrary>], iteration_bounds = array<i64: 1>, scalar_prefetch = 0 : i64, scratch_operands = 0 : i64, tpu.core_type = #tpu.core_type<tc>, window_params = [{transform_indices = @transform_0, window_bounds = array<i64: 24, 64>}, {pipeline_mode = #tpu.pipeline_mode<synchronous>, transform_indices = @transform_1, window_bounds = array<i64: 16, 24>}, {transform_indices = @transform_2, window_bounds = array<i64: 16, 64>}, {pipeline_mode = #tpu.pipeline_mode<synchronous>, transform_indices = @transform_3, window_bounds = array<i64: 16, 1>}, {pipeline_mode = #tpu.pipeline_mode<synchronous>, transform_indices = @transform_4, window_bounds = array<i64: 16, 1>}]} {
    %c0_i32 = arith.constant 0 : i32
    %0 = arith.cmpi eq, %arg0, %c0_i32 : i32
    %1 = arith.extui %0 : i1 to i32
    %c0_i32_0 = arith.constant 0 : i32
    %2 = arith.cmpi ne, %1, %c0_i32_0 : i32
    scf.if %2 {
      %cst_16 = arith.constant 0.000000e+00 : f32
      %18 = vector.broadcast %cst_16 : f32 to vector<16x1xf32>
      %c0_17 = arith.constant 0 : index
      %c0_18 = arith.constant 0 : index
      %19 = vector.load %arg4[%c0_17, %c0_18] : memref<16x1xf32, #tpu.memory_space<vmem>>, vector<16x1xf32>
      tpu.vector_store %arg4[%c0_17, %c0_18], %18 {strides = array<i32>} : memref<16x1xf32, #tpu.memory_space<vmem>>, vector<16x1xf32>,
      %cst_19 = arith.constant 0.000000e+00 : f32
      %20 = vector.broadcast %cst_19 : f32 to vector<16x1xf32>
      %c0_20 = arith.constant 0 : index
      %c0_21 = arith.constant 0 : index
      %21 = vector.load %arg5[%c0_20, %c0_21] : memref<16x1xf32, #tpu.memory_space<vmem>>, vector<16x1xf32>
      tpu.vector_store %arg5[%c0_20, %c0_21], %20 {strides = array<i32>} : memref<16x1xf32, #tpu.memory_space<vmem>>, vector<16x1xf32>,
    } else {
    }
    %c0 = arith.constant 0 : index
    %c0_1 = arith.constant 0 : index
    %3 = vector.load %arg2[%c0, %c0_1] : memref<16x24xf32, #tpu.memory_space<vmem>>, vector<16x24xf32>
    %c0_2 = arith.constant 0 : index
    %c0_3 = arith.constant 0 : index
    %4 = vector.load %arg1[%c0_2, %c0_3] : memref<24x64xf32, #tpu.memory_space<vmem>>, vector<24x64xf32>
    %cst = arith.constant dense<0.000000e+00> : vector<16x64xf32>
    %5 = tpu.matmul %3, %4, %cst {dimension_numbers = #tpu.dot_dimension_numbers<[1], [0], [0], [1], [0, 0, 1, 1], [], []>} : vector<16x24xf32>, vector<24x64xf32>, vector<16x64xf32> -> vector<16x64xf32>
    %c0_4 = arith.constant 0 : index
    %c0_5 = arith.constant 0 : index
    %6 = vector.load %arg3[%c0_4, %c0_5] : memref<16x64xf32, #tpu.memory_space<vmem>>, vector<16x64xf32>
    tpu.vector_store %arg3[%c0_4, %c0_5], %5 {strides = array<i32>} : memref<16x64xf32, #tpu.memory_space<vmem>>, vector<16x64xf32>,
    %c0_6 = arith.constant 0 : index
    %c0_7 = arith.constant 0 : index
    %7 = vector.load %arg4[%c0_6, %c0_7] : memref<16x1xf32, #tpu.memory_space<vmem>>, vector<16x1xf32>
    %cst_8 = arith.constant dense<0.000000e+00> : vector<16xf32>
    %8 = vector.multi_reduction <add>, %5, %cst_8 [1] : vector<16x64xf32> to vector<16xf32>
    %9 = vector.shape_cast %8 : vector<16xf32> to vector<16x1xf32>
    %10 = arith.addf %7, %9 : vector<16x1xf32>
    %c0_9 = arith.constant 0 : index
    %c0_10 = arith.constant 0 : index
    %11 = vector.load %arg4[%c0_9, %c0_10] : memref<16x1xf32, #tpu.memory_space<vmem>>, vector<16x1xf32>
    tpu.vector_store %arg4[%c0_9, %c0_10], %10 {strides = array<i32>} : memref<16x1xf32, #tpu.memory_space<vmem>>, vector<16x1xf32>,
    %c0_11 = arith.constant 0 : index
    %c0_12 = arith.constant 0 : index
    %12 = vector.load %arg5[%c0_11, %c0_12] : memref<16x1xf32, #tpu.memory_space<vmem>>, vector<16x1xf32>
    %13 = arith.mulf %5, %5 : vector<16x64xf32>
    %cst_13 = arith.constant dense<0.000000e+00> : vector<16xf32>
    %14 = vector.multi_reduction <add>, %13, %cst_13 [1] : vector<16x64xf32> to vector<16xf32>
    %15 = vector.shape_cast %14 : vector<16xf32> to vector<16x1xf32>
    %16 = arith.addf %12, %15 : vector<16x1xf32>
    %c0_14 = arith.constant 0 : index
    %c0_15 = arith.constant 0 : index
    %17 = vector.load %arg5[%c0_14, %c0_15] : memref<16x1xf32, #tpu.memory_space<vmem>>, vector<16x1xf32>
    tpu.vector_store %arg5[%c0_14, %c0_15], %16 {strides = array<i32>} : memref<16x1xf32, #tpu.memory_space<vmem>>, vector<16x1xf32>,
    return
  }
  func.func @transform_0(%arg0: i32) -> (i32, i32) {
    %c0_i32 = arith.constant 0 : i32
    %c0_i32_0 = arith.constant 0 : i32
    return %c0_i32, %arg0 : i32, i32
  }
  func.func @transform_1(%arg0: i32) -> (i32, i32) {
    %c0_i32 = arith.constant 0 : i32
    %c0_i32_0 = arith.constant 0 : i32
    %c0_i32_1 = arith.constant 0 : i32
    return %c0_i32, %c0_i32_0 : i32, i32
  }
  func.func @transform_2(%arg0: i32) -> (i32, i32) {
    %c0_i32 = arith.constant 0 : i32
    %c0_i32_0 = arith.constant 0 : i32
    return %c0_i32, %arg0 : i32, i32
  }
  func.func @transform_3(%arg0: i32) -> (i32, i32) {
    %c0_i32 = arith.constant 0 : i32
    %c0_i32_0 = arith.constant 0 : i32
    %c0_i32_1 = arith.constant 0 : i32
    return %c0_i32, %c0_i32_0 : i32, i32
  }
  func.func @transform_4(%arg0: i32) -> (i32, i32) {
    %c0_i32 = arith.constant 0 : i32
    %c0_i32_0 = arith.constant 0 : i32
    %c0_i32_1 = arith.constant 0 : i32
    return %c0_i32, %c0_i32_0 : i32, i32
  }
}

</mosaic_0001>

<bundles_post_ra>
// kernel: tpu_custom_call.1
= control target key start
LH: loop header
LB: loop body
LE: loop exit
PB: predicated region body
PF: predicated region fallthrough
CT: control target
= control target key end

     0   :  { %10 = vsyncpa [#allocation3], 0  ;;  %s376_s0 = inlined_call_operand.hbm [shape: f32[24,64], index: 0, kind: input, shape index: {}]   ;;  %s377_s1 = inlined_call_operand.hbm [shape: f32[16,24], index: 1, kind: input, shape index: {}]   ;;  %s378_s2 = inlined_call_operand.hbm [shape: f32[16,64], index: 2, kind: output, shape index: {0}]   ;;  %s379_s3 = inlined_call_operand.vmem [shape: f32[16,1], index: 3, kind: output, shape index: {1}]   ;;  %s380_s4 = inlined_call_operand.vmem [shape: f32[16,1], index: 4, kind: output, shape index: {2}]  }
   0x1   :  { %11 = vsyncpa [#allocation6], 0 }
   0x2   :  { %12 = vsyncpa [#allocation4], 0  ;;  %s283_s15 = smov [#allocation2]  }
   0x3   :  { %s18_s16 = sshll.u32 %s283_s15, 4  ;;  %s19_s16 = int_to_ptr.vmem [resolvable:$true] %s18_s16 }
   0x4   :  { %s225_s17 = scalar_lea.vmem %s19_s16, 384  ;;  %p230_p1 = scmp.lt.s32.totalorder %s19_s16, %s19_s16 }
   0x5   :  { %p226_p0 = scmp.ne.s32.totalorder %s19_s16, %s225_s17  ;;  %p231_p2 = scmp.lt.s32.totalorder %s225_s17, %s225_s17 }
   0x7   :  { %p232_p3 = por %p231_p2, %p230_p1 }
   0x9   :  { %p233_p4 = pnand %p232_p3, %p226_p0 }
   0xb   :  { %236 = shalt.err (!%p233_p4)
}
   0xc   :  { %s284_s18 = smov 128   ;;  %s285_s19 = smov 8  }
   0xd   :  { %24 = dma.hbm_to_vmem [thread:$0]  %s376_s0, 384, %s19_s16, [#allocation3], %s284_s18, %s284_s18, %s285_s19  }
   0xe   :  { %s286_s22 = smov [#allocation5]  }
   0xf   :  { %s30_s23 = sshll.u32 %s286_s22, 4  ;;  %s31_s23 = int_to_ptr.vmem [resolvable:$true] %s30_s23 }
  0x10   :  { %s245_s24 = scalar_lea.vmem %s31_s23, 256  ;;  %p250_p6 = scmp.lt.s32.totalorder %s31_s23, %s31_s23 }
  0x11   :  { %p246_p5 = scmp.ne.s32.totalorder %s31_s23, %s245_s24  ;;  %p251_p7 = scmp.lt.s32.totalorder %s245_s24, %s245_s24 }
  0x13   :  { %p252_p8 = por %p251_p7, %p250_p6 }
  0x15   :  { %p253_p9 = pnand %p252_p8, %p246_p5 }
  0x17   :  { %256 = shalt.err (!%p253_p9)
}
  0x18   :  { %36 = dma.hbm_to_vmem [thread:$0]  %s377_s1, 256, %s31_s23, [#allocation6], %s284_s18, %s284_s18, %s285_s19  }
  0x19   :  { %277 = dma.done.wait [#allocation3], 384  }
  0x1a   :  { %278 = vsyncadd [#allocation3], 4294966912 }
  0x1b   :  { %279 = dma.done.wait [#allocation6], 256  }
  0x1c   :  { %280 = vsyncadd [#allocation6], 4294967040  ;;  %vm57_vm0 = vcmask 195584   ;;  %v56_v0 = vld [vmem:[#allocation2 + $0x10] sm:$0xff]  ;;  %v55_v1 = vld [vmem:[#allocation2 + $0x8] sm:$0xff]  ;;  %vm47_vm1 = vcmask 7168  }
  0x1d   :  { %202 = vmatprep.subr.mxu0 %v56_v0  ;;  %v52_v2 = vld [vmem:[#allocation5] sm:$0xff]  ;;  %v54_v3 = vld [vmem:[#allocation2] sm:$0xff]  ;;  %v287_v5 = vmov 0.0   ;;  %vm139_vm2 = vcmask 523264   ;;  %s288_s7 = smov [#allocation7]  }
  0x1e   :  { %203 = vmatpush3.msra.mxu0 %v56_v0  ;;  %208 = vmatprep.mubr.msk.f32.mxu0 %vm57_vm0, %v52_v2  ;;  %v53_v4 = vld [vmem:[#allocation5 + $0x8] sm:$0xff]  ;;  %48 = vst.msk [vmem:[%s379_s3] sm:$0xff] %vm47_vm1, %v287_v5  ;;  %49 = vst.msk [vmem:[%s379_s3 + $0x8] sm:$0xff] %vm47_vm1, %v287_v5  ;;  %s174_s8 = sshll.u32 %s288_s7, 4  ;;  %s175_s8 = int_to_ptr.vmem [resolvable:$true] %s174_s8 }
  0x1f   :  { %204 = vmatprep.subr.mxu0 %v55_v1  ;;  %50 = vst.msk [vmem:[%s380_s4] sm:$0xff] %vm47_vm1, %v287_v5  ;;  %51 = vst.msk [vmem:[%s380_s4 + $0x8] sm:$0xff] %vm47_vm1, %v287_v5  ;;  %s257_s9 = scalar_lea.vmem %s175_s8, 256  ;;  %p262_p11 = scmp.lt.s32.totalorder %s175_s8, %s175_s8 }
  0x20   :  { %205 = vmatpush3.msra.mxu0 %v55_v1  ;;  %p258_p10 = scmp.ne.s32.totalorder %s175_s8, %s257_s9  ;;  %p263_p12 = scmp.lt.s32.totalorder %s257_s9, %s257_s9 }
  0x21   :  { %206 = vmatprep.subr.mxu0 %v54_v3 }
  0x22   :  { %207 = vmatpush3.msra.mxu0 %v54_v3  ;;  %p264_p13 = por %p263_p12, %p262_p11 }
  0x23   :  { %209 = vmatmul.mubr.msk.f32.vlgmr.msra.gmra.mxu0 %vm57_vm0, %v53_v4 }
  0x24   :  { %p265_p0 = pnand %p264_p13, %p258_p10 }
  0xe3   :  { %v210_v6 = vpop.f32.mrf.mxu0 }
  0xe4   :  { %141 = vst.msk [vmem:[#allocation7 + $0x8] sm:$0xff] %vm139_vm2, %v210_v6  ;;  %v158_v11 = vmul.f32 %v210_v6, %v210_v6  ;;  %v147_v12 = vsel %vm139_vm2, %v210_v6, 0.0 }
  0xe5   :  { %v130_v7 = vpop.f32.mrf.mxu0 }
  0xe6   :  { %140 = vst.msk [vmem:[#allocation7] sm:$0xff] %vm139_vm2, %v130_v7  ;;  %v144_v8 = vsel %vm139_vm2, %v130_v7, 0.0  ;;  %v157_v9 = vmul.f32 %v130_v7, %v130_v7  ;;  %v162_v13 = vsel %vm139_vm2, %v158_v11, 0.0 }
  0xe7   :  { %145 = vadd.xlane.f32.xlu0 %v144_v8 }
  0xe8   :  { %v159_v10 = vsel %vm139_vm2, %v157_v9, 0.0 }
  0xe9   :  { %160 = vadd.xlane.f32.xlu1 %v159_v10 }
  0xeb   :  { %148 = vadd.xlane.f32.xlu0 %v147_v12 }
  0xed   :  { %163 = vadd.xlane.f32.xlu1 %v162_v13 }
  0xee   :  { %268 = shalt.err (!%p265_p0)
}
  0xef   :  { %180 = dma.vmem_to_hbm [thread:$0]  %s175_s8, 256, %s378_s2, [#allocation4], %s284_s18, %s284_s18, %s285_s19  }
  0xf0   :  { %v142_v14 = vld [vmem:[%s379_s3] sm:$0xff]  ;;  %v143_v19 = vld [vmem:[%s379_s3 + $0x8] sm:$0xff] }
  0xf1   :  { %v155_v16 = vld [vmem:[%s380_s4] sm:$0xff]  ;;  %v156_v22 = vld [vmem:[%s380_s4 + $0x8] sm:$0xff] }
 0x170   :  { %v146_v15 = vpop.xlane.xlu0 %145 }
 0x171   :  { %v150_v17 = vadd.f32 %v146_v15, %v142_v14 }
 0x172   :  { %v161_v18 = vpop.xlane.xlu1 %160 }
 0x173   :  { %153 = vst.msk [vmem:[%s379_s3] sm:$0xff] %vm47_vm1, %v150_v17  ;;  %v165_v20 = vadd.f32 %v161_v18, %v155_v16 }
 0x174   :  { %v149_v21 = vpop.xlane.xlu0 %148 }
 0x175   :  { %167 = vst.msk [vmem:[%s380_s4] sm:$0xff] %vm47_vm1, %v165_v20  ;;  %v151_v23 = vadd.f32 %v149_v21, %v143_v19 }
 0x176   :  { %v164_v24 = vpop.xlane.xlu1 %163 }
 0x177   :  { %154 = vst.msk [vmem:[%s379_s3 + $0x8] sm:$0xff] %vm47_vm1, %v151_v23  ;;  %v166_v25 = vadd.f32 %v164_v24, %v156_v22 }
 0x179   :  { %168 = vst.msk [vmem:[%s380_s4 + $0x8] sm:$0xff] %vm47_vm1, %v166_v25 }
 0x17a   :  { %281 = dma.done.wait [#allocation4], 256  }
 0x17b   :  { %282 = vsyncadd [#allocation4], 4294967040 }
 0x17c   :  { %192 = vsyncpa [#allocation3], 1 }
 0x17d   :  { %193 = vsyncpa [#allocation6], 1 }
 0x17e   :  { %194 = vsyncpa [#allocation4], 1 }

</bundles_post_ra>
